<compile_context>
chip_gen: v5e
topology: v5e:2x2
jax: 0.10.0
libtpu: 0.0.40
codegen_flags: <defaults>
</compile_context>

<pallas_src>
import jax
import jax.numpy as jnp
from jax import lax
from jax.experimental import pallas as pl
from jax.experimental.pallas import tpu as pltpu


# ----------------------------- kernel body ----------------------------------
def ffn_kernel(x_ref, w1_ref, b1_ref, w2_ref, b2_ref, o_ref):
    x = x_ref[...]                                    # [TB, dim_k]
    w1 = w1_ref[...]                                  # [hid_k, dim_k]
    w2 = w2_ref[...]                                  # [dim_k, hid_k]

    # ffn1: x @ W1^T + b1 (NT contraction, no wrapper-side transposes).
    h = lax.dot_general(
        x, w1, (((1,), (1,)), ((), ())), preferred_element_type=jnp.float32
    ) + b1_ref[...]                                   # [TB, hid_k]

    # Sigmoid via tanh on the EUP (exact identity: sigmoid(z)=0.5*tanh(z/2)+0.5).
    h = 0.5 * jnp.tanh(0.5 * h) + 0.5

    # ffn2: h @ W2^T + b2.
    out = lax.dot_general(
        h.astype(w2.dtype), w2, (((1,), (1,)), ((), ())),
        preferred_element_type=jnp.float32,
    ) + b2_ref[...]                                   # [TB, dim_k]

    o_ref[...] = out.astype(o_ref.dtype)


# ----------------------------- helpers ---------------------------------------
def _round_up(v, m):
    return ((v + m - 1) // m) * m


def _round_down(v, m):
    return (v // m) * m


def _sublane(dtype_bytes):
    # f32 -> 8, bf16 -> 16, int8/fp8 -> 32 rows per minimum tile.
    return max(8, 32 // max(dtype_bytes, 1))


def _vmem_limit_bytes():
    # Generation-aware scoped-VMEM limit: leave headroom on v7x (64 MiB physical
    # per TensorCore); 64 MiB is comfortable on v5e/v6e (128 MiB physical).
    cap = None
    try:
        info = pltpu.get_tpu_info()
        cap = getattr(info, "vmem_capacity_bytes", None)
    except Exception:
        cap = None
    if cap is None:
        cap = 128 * 1024 * 1024
    if cap <= 64 * 1024 * 1024:          # v7x-class part
        return 48 * 1024 * 1024
    return 64 * 1024 * 1024


def _pick_batch_tile(batch, row_bytes, sublane, vmem_budget_bytes,
                     target_tile_bytes=8 * 1024 * 1024):
    """Rows per grid step. Byte-based cap; dtype-aware sublane rounding."""
    # x tile + out tile, each double-buffered: 4 * tb * row_bytes of VMEM.
    tb_budget = max(1, vmem_budget_bytes // (4 * max(row_bytes, 1)))
    tb_target = max(1, target_tile_bytes // max(row_bytes, 1))
    tb = min(tb_budget, tb_target)
    tb = max(sublane, _round_down(tb, sublane))
    if tb >= batch:
        if batch >= 2 * sublane:
            # Keep >=2 grid steps so the "parallel" axis shards across v7x TCs.
            tb = _round_up(pl.cdiv(batch, 2), sublane)
        else:
            tb = batch                    # full-array block (no (8,128) constraint)
    return tb


def _block_diag(w, g):
    # [r, c] -> [g*r, g*c] with g copies of w on the diagonal (built once, wrapper-side).
    r, c = w.shape
    eye = jnp.eye(g, dtype=w.dtype)
    return (eye[:, None, :, None] * w[None, :, None, :]).reshape(g * r, g * c)


# ----------------------------- wrapper ----------------------------------------
def ffn_forward(x, t, params):
    # `t` is accepted but unused, matching FFNModel.forward(x, t).
    del t
    w1, b1, w2, b2 = params["w1"], params["b1"], params["w2"], params["b2"]
    batch, dim = x.shape
    hidden = w1.shape[0]                  # 5
    dtype = x.dtype
    dtype_bytes = jnp.dtype(dtype).itemsize
    sublane = _sublane(dtype_bytes)

    # ---- pad hidden (5 -> sublane multiple). Padded W2 hidden-columns are zero,
    # ---- so sigmoid(0)=0.5 on the pad contributes exactly 0 to the output.
    hp = _round_up(hidden, sublane)
    w1p = jnp.zeros((hp, dim), dtype).at[:hidden, :].set(w1.astype(dtype))
    b1p = jnp.zeros((hp,), dtype).at[:hidden].set(b1.astype(dtype))
    w2p = jnp.zeros((dim, hp), dtype).at[:, :hidden].set(w2.astype(dtype))
    b2p = b2.astype(dtype)

    # ---- lane-dense grouping when dim < 128 (free row-major reshape of x/out;
    # ---- block-diagonal weights built once in the wrapper).
    g = 1
    if dim < 128 and 128 % dim == 0 and batch % (128 // dim) == 0:
        g = 128 // dim
    if g > 1:
        x_k = x.reshape(batch // g, g * dim)
        w1_k = _block_diag(w1p, g)                      # [g*hp, g*dim]
        w2_k = _block_diag(w2p, g)                      # [g*dim, g*hp]
        b1_k = jnp.tile(b1p, g).reshape(1, g * hp)
        b2_k = jnp.tile(b2p, g).reshape(1, g * dim)
    else:
        x_k, w1_k, w2_k = x, w1p, w2p
        b1_k = b1p.reshape(1, hp)
        b2_k = b2p.reshape(1, dim)

    batch_k, dim_k = x_k.shape
    hid_k = w1_k.shape[0]

    # ---- tiling / VMEM budget (generation-aware) ------------------------------
    vmem_limit = _vmem_limit_bytes()
    row_bytes = dim_k * dtype_bytes
    tb = _pick_batch_tile(batch_k, row_bytes, sublane, vmem_limit // 2)
    grid = (pl.cdiv(batch_k, tb),)

    cost = pl.CostEstimate(
        flops=4 * batch * dim * hidden,                 # two matmuls
        transcendentals=batch * hidden,                 # sigmoid
        bytes_accessed=(2 * batch * dim + 2 * hidden * dim + hidden + dim)
        * dtype_bytes,
    )

    out = pl.pallas_call(
        ffn_kernel,
        out_shape=jax.ShapeDtypeStruct((batch_k, dim_k), dtype),
        grid=grid,
        in_specs=[
            pl.BlockSpec((tb, dim_k), lambda i: (i, 0)),      # x: tiled over batch
            pl.BlockSpec((hid_k, dim_k), lambda i: (0, 0)),   # w1': resident
            pl.BlockSpec((1, hid_k), lambda i: (0, 0)),       # b1': resident
            pl.BlockSpec((dim_k, hid_k), lambda i: (0, 0)),   # w2': resident
            pl.BlockSpec((1, dim_k), lambda i: (0, 0)),       # b2': resident
        ],
        out_specs=pl.BlockSpec((tb, dim_k), lambda i: (i, 0)),
        compiler_params=pltpu.CompilerParams(
            dimension_semantics=("parallel",),
            vmem_limit_bytes=vmem_limit,
        ),
        cost_estimate=cost,
    )(x_k, w1_k, b1_k, w2_k, b2_k)

    return out.reshape(batch, dim)


# ----------------------------- reference & test --------------------------------
def init_params(dim, hidden=5, dtype=jnp.float32, seed=0):
    # Deterministic init mimicking nn.Linear's uniform(-1/sqrt(fan_in), 1/sqrt(fan_in)).
    key = jax.random.PRNGKey(seed)
    k1, k2, k3, k4 = jax.random.split(key, 4)
    bound1 = 1.0 / jnp.sqrt(dim)
    bound2 = 1.0 / jnp.sqrt(hidden)
    return {
        "w1": jax.random.uniform(k1, (hidden, dim), dtype, -bound1, bound1),
        "b1": jax.random.uniform(k2, (hidden,), dtype, -bound1, bound1),
        "w2": jax.random.uniform(k3, (dim, hidden), dtype, -bound2, bound2),
        "b2": jax.random.uniform(k4, (dim,), dtype, -bound2, bound2),
    }


def ffn_reference(x, params):
    h = x @ params["w1"].T + params["b1"]
    h = jax.nn.sigmoid(h)
    return h @ params["w2"].T + params["b2"]


if __name__ == "__main__":
    key = jax.random.PRNGKey(0)
    kx, kt = jax.random.split(key)

    # Primary small case (lane-dense grouped path: dim=16 -> g=8).
    batch, dim = 8, 16
    params = init_params(dim)
    x = jax.random.normal(kx, (batch, dim), jnp.float32)
    t = jax.random.uniform(kt, (batch, 1), jnp.float32)   # unused, as in the module

    out = jax.block_until_ready(ffn_forward(x, t, params))
    ref = ffn_reference(x, params)
    assert out.shape == (batch, dim)
    assert jnp.allclose(out, ref, atol=1e-5, rtol=1e-5), "mismatch (grouped path)"

    # Coverage: tiled grid (>=2 steps) on the grouped path.
    x2 = jax.random.normal(jax.random.PRNGKey(1), (256, dim), jnp.float32)
    out2 = jax.block_until_ready(ffn_forward(x2, None, params))
    assert jnp.allclose(out2, ffn_reference(x2, params), atol=1e-5, rtol=1e-5), \
        "mismatch (tiled grouped path)"

    # Coverage: non-grouped fallback (batch not divisible by 128//dim).
    x3 = jax.random.normal(jax.random.PRNGKey(2), (12, dim), jnp.float32)
    out3 = jax.block_until_ready(ffn_forward(x3, None, params))
    assert jnp.allclose(out3, ffn_reference(x3, params), atol=1e-5, rtol=1e-5), \
        "mismatch (fallback path)"

    print("KERNEL_OK")
</pallas_src>

<mosaic_0001>
module attributes {stable_mosaic.version = 11 : i64} {
  func.func @ffn_kernel(%arg0: i32, %arg1: memref<1x128xf32, #tpu.memory_space<vmem>>, %arg2: memref<64x128xf32, #tpu.memory_space<vmem>>, %arg3: memref<1x64xf32, #tpu.memory_space<vmem>>, %arg4: memref<128x64xf32, #tpu.memory_space<vmem>>, %arg5: memref<1x128xf32, #tpu.memory_space<vmem>>, %arg6: memref<1x128xf32, #tpu.memory_space<vmem>>) attributes {dimension_semantics = [#tpu.dimension_semantics<parallel>], iteration_bounds = array<i64: 1>, scalar_prefetch = 0 : i64, scratch_operands = 0 : i64, tpu.core_type = #tpu.core_type<tc>, window_params = [{transform_indices = @transform_0, window_bounds = array<i64: 1, 128>}, {pipeline_mode = #tpu.pipeline_mode<synchronous>, transform_indices = @transform_1, window_bounds = array<i64: 64, 128>}, {pipeline_mode = #tpu.pipeline_mode<synchronous>, transform_indices = @transform_2, window_bounds = array<i64: 1, 64>}, {pipeline_mode = #tpu.pipeline_mode<synchronous>, transform_indices = @transform_3, window_bounds = array<i64: 128, 64>}, {pipeline_mode = #tpu.pipeline_mode<synchronous>, transform_indices = @transform_4, window_bounds = array<i64: 1, 128>}, {transform_indices = @transform_5, window_bounds = array<i64: 1, 128>}]} {
    %c0 = arith.constant 0 : index
    %c0_0 = arith.constant 0 : index
    %0 = vector.load %arg1[%c0, %c0_0] : memref<1x128xf32, #tpu.memory_space<vmem>>, vector<1x128xf32>
    %c0_1 = arith.constant 0 : index
    %c0_2 = arith.constant 0 : index
    %1 = vector.load %arg2[%c0_1, %c0_2] : memref<64x128xf32, #tpu.memory_space<vmem>>, vector<64x128xf32>
    %c0_3 = arith.constant 0 : index
    %c0_4 = arith.constant 0 : index
    %2 = vector.load %arg4[%c0_3, %c0_4] : memref<128x64xf32, #tpu.memory_space<vmem>>, vector<128x64xf32>
    %cst = arith.constant dense<0.000000e+00> : vector<1x64xf32>
    %3 = tpu.matmul %0, %1, %cst {dimension_numbers = #tpu.dot_dimension_numbers<[1], [1], [0], [0], [0, 0, 1, 0], [], []>} : vector<1x128xf32>, vector<64x128xf32>, vector<1x64xf32> -> vector<1x64xf32>
    %c0_5 = arith.constant 0 : index
    %c0_6 = arith.constant 0 : index
    %4 = vector.load %arg3[%c0_5, %c0_6] : memref<1x64xf32, #tpu.memory_space<vmem>>, vector<1x64xf32>
    %5 = arith.addf %3, %4 : vector<1x64xf32>
    %cst_7 = arith.constant 5.000000e-01 : f32
    %6 = vector.broadcast %cst_7 : f32 to vector<1x64xf32>
    %7 = arith.mulf %6, %5 : vector<1x64xf32>
    %8 = math.tanh %7 : vector<1x64xf32>
    %cst_8 = arith.constant 5.000000e-01 : f32
    %9 = vector.broadcast %cst_8 : f32 to vector<1x64xf32>
    %10 = arith.mulf %9, %8 : vector<1x64xf32>
    %cst_9 = arith.constant 5.000000e-01 : f32
    %11 = vector.broadcast %cst_9 : f32 to vector<1x64xf32>
    %12 = arith.addf %10, %11 : vector<1x64xf32>
    %cst_10 = arith.constant dense<0.000000e+00> : vector<1x128xf32>
    %13 = tpu.matmul %12, %2, %cst_10 {dimension_numbers = #tpu.dot_dimension_numbers<[1], [1], [0], [0], [0, 0, 1, 0], [], []>} : vector<1x64xf32>, vector<128x64xf32>, vector<1x128xf32> -> vector<1x128xf32>
    %c0_11 = arith.constant 0 : index
    %c0_12 = arith.constant 0 : index
    %14 = vector.load %arg5[%c0_11, %c0_12] : memref<1x128xf32, #tpu.memory_space<vmem>>, vector<1x128xf32>
    %15 = arith.addf %13, %14 : vector<1x128xf32>
    %c0_13 = arith.constant 0 : index
    %c0_14 = arith.constant 0 : index
    %16 = vector.load %arg6[%c0_13, %c0_14] : memref<1x128xf32, #tpu.memory_space<vmem>>, vector<1x128xf32>
    tpu.vector_store %arg6[%c0_13, %c0_14], %15 {strides = array<i32>} : memref<1x128xf32, #tpu.memory_space<vmem>>, vector<1x128xf32>,
    return
  }
  func.func @transform_0(%arg0: i32) -> (i32, i32) {
    %c0_i32 = arith.constant 0 : i32
    %c0_i32_0 = arith.constant 0 : i32
    return %arg0, %c0_i32 : i32, i32
  }
  func.func @transform_1(%arg0: i32) -> (i32, i32) {
    %c0_i32 = arith.constant 0 : i32
    %c0_i32_0 = arith.constant 0 : i32
    %c0_i32_1 = arith.constant 0 : i32
    return %c0_i32, %c0_i32_0 : i32, i32
  }
  func.func @transform_2(%arg0: i32) -> (i32, i32) {
    %c0_i32 = arith.constant 0 : i32
    %c0_i32_0 = arith.constant 0 : i32
    %c0_i32_1 = arith.constant 0 : i32
    return %c0_i32, %c0_i32_0 : i32, i32
  }
  func.func @transform_3(%arg0: i32) -> (i32, i32) {
    %c0_i32 = arith.constant 0 : i32
    %c0_i32_0 = arith.constant 0 : i32
    %c0_i32_1 = arith.constant 0 : i32
    return %c0_i32, %c0_i32_0 : i32, i32
  }
  func.func @transform_4(%arg0: i32) -> (i32, i32) {
    %c0_i32 = arith.constant 0 : i32
    %c0_i32_0 = arith.constant 0 : i32
    %c0_i32_1 = arith.constant 0 : i32
    return %c0_i32, %c0_i32_0 : i32, i32
  }
  func.func @transform_5(%arg0: i32) -> (i32, i32) {
    %c0_i32 = arith.constant 0 : i32
    %c0_i32_0 = arith.constant 0 : i32
    return %arg0, %c0_i32 : i32, i32
  }
}

</mosaic_0001>

<bundles_post_ra>
// kernel: tpu_custom_call.1
= control target key start
LH: loop header
LB: loop body
LE: loop exit
PB: predicated region body
PF: predicated region fallthrough
CT: control target
= control target key end

     0   :  { %vm72_vm0 = vcmask 523264   ;;  %s339_s0 = inlined_call_operand.vmem [shape: f32[1,128], index: 0, kind: input, shape index: {}]   ;;  %s340_s1 = inlined_call_operand.vmem [shape: f32[64,128], index: 1, kind: input, shape index: {}]   ;;  %s341_s2 = inlined_call_operand.vmem [shape: f32[1,64], index: 2, kind: input, shape index: {}]   ;;  %s342_s3 = inlined_call_operand.vmem [shape: f32[128,64], index: 3, kind: input, shape index: {}]   ;;  %s343_s4 = inlined_call_operand.vmem [shape: f32[1,128], index: 4, kind: input, shape index: {}]   ;;  %s344_s5 = inlined_call_operand.hbm [shape: f32[1,128], index: 5, kind: output, shape index: {}]  }
   0x1   :  { %v29_v0 = vld [vmem:[%s340_s1 + $0x38] sm:$0xff]  ;;  %v28_v1 = vld [vmem:[%s340_s1 + $0x30] sm:$0xff]  ;;  %v27_v4 = vld [vmem:[%s340_s1 + $0x28] sm:$0xff] }
   0x2   :  { %55 = vmatpush.xpose.msra.mxu0 %v29_v0  ;;  %v45_v2 = vld [vmem:[%s342_s3 + $0x78] sm:$0xff]  ;;  %v44_v3 = vld [vmem:[%s342_s3 + $0x70] sm:$0xff] }
   0x3   :  { %161 = vmatpush.xpose.msk.msra.mxu1 %vm72_vm0, %v45_v2 }
   0x6   :  { %56 = vmatpush.xpose.msra.mxu0 %v28_v1 }
   0x7   :  { %10 = vsyncpa [#allocation3], 0  ;;  %162 = vmatpush.xpose.msk.msra.mxu1 %vm72_vm0, %v44_v3  ;;  %v43_v5 = vld [vmem:[%s342_s3 + $0x68] sm:$0xff]  ;;  %v26_v6 = vld [vmem:[%s340_s1 + $0x20] sm:$0xff]  ;;  %s152_s23 = sshll.u32 %s344_s5, 4  ;;  %s153_s23 = int_to_ptr.hbm [resolvable:$true] %s152_s23 }
   0x8   :  { %v42_v7 = vld [vmem:[%s342_s3 + $0x60] sm:$0xff]  ;;  %v25_v8 = vld [vmem:[%s340_s1 + $0x18] sm:$0xff]  ;;  %v24_v10 = vld [vmem:[%s340_s1 + $0x10] sm:$0xff] }
   0x9   :  { %v41_v9 = vld [vmem:[%s342_s3 + $0x58] sm:$0xff]  ;;  %v40_v11 = vld [vmem:[%s342_s3 + $0x50] sm:$0xff]  ;;  %v23_v12 = vld [vmem:[%s340_s1 + $0x8] sm:$0xff] }
   0xa   :  { %57 = vmatpush.xpose.msra.mxu0 %v27_v4  ;;  %v39_v13 = vld [vmem:[%s342_s3 + $0x48] sm:$0xff]  ;;  %v22_v14 = vld [vmem:[%s340_s1] sm:$0xff]  ;;  %v37_v17 = vld [vmem:[%s342_s3 + $0x38] sm:$0xff] }
   0xb   :  { %163 = vmatpush.xpose.msk.msra.mxu1 %vm72_vm0, %v43_v5  ;;  %v21_v15 = vld [vmem:[%s339_s0] sm:$0x1]  ;;  %v36_v18 = vld [vmem:[%s342_s3 + $0x30] sm:$0xff]  ;;  %v35_v19 = vld [vmem:[%s342_s3 + $0x28] sm:$0xff] }
   0xc   :  { %v38_v16 = vld [vmem:[%s342_s3 + $0x40] sm:$0xff]  ;;  %v33_v21 = vld [vmem:[%s342_s3 + $0x18] sm:$0xff]  ;;  %v32_v22 = vld [vmem:[%s342_s3 + $0x10] sm:$0xff] }
   0xd   :  { %v34_v20 = vld [vmem:[%s342_s3 + $0x20] sm:$0xff]  ;;  %v31_v23 = vld [vmem:[%s342_s3 + $0x8] sm:$0xff] }
   0xe   :  { %58 = vmatpush.xpose.msra.mxu0 %v26_v6  ;;  %v30_v24 = vld [vmem:[%s342_s3] sm:$0xff]  ;;  %s207_s3 = smov [#allocation2]  }
   0xf   :  { %164 = vmatpush.xpose.msk.msra.mxu1 %vm72_vm0, %v42_v7  ;;  %v46_v25 = vld [vmem:[%s341_s2] sm:$0x1]  ;;  %s150_s20 = sshll.u32 %s207_s3, 4  ;;  %s151_s20 = int_to_ptr.vmem [resolvable:$true] %s150_s20 }
  0x10   :  { %v71_v32 = vld [vmem:[%s343_s4] sm:$0x1] }
  0x12   :  { %59 = vmatpush.xpose.msra.mxu0 %v25_v8 }
  0x13   :  { %165 = vmatpush.xpose.msk.msra.mxu1 %vm72_vm0, %v41_v9 }
  0x16   :  { %60 = vmatpush.xpose.msra.mxu0 %v24_v10 }
  0x17   :  { %166 = vmatpush.xpose.msk.msra.mxu1 %vm72_vm0, %v40_v11 }
  0x1a   :  { %61 = vmatpush.xpose.msra.mxu0 %v23_v12 }
  0x1b   :  { %167 = vmatpush.xpose.msk.msra.mxu1 %vm72_vm0, %v39_v13 }
  0x1e   :  { %62 = vmatpush.xpose.msra.mxu0 %v22_v14 }
  0x1f   :  { %168 = vmatpush.xpose.msk.msra.mxu1 %vm72_vm0, %v38_v16 }
  0x21   :  { %63 = vmatmul.f32.vlgmr.msra.gmra.mxu0 %v21_v15 }
  0x23   :  { %169 = vmatpush.xpose.msk.msra.mxu1 %vm72_vm0, %v37_v17 }
  0x27   :  { %170 = vmatpush.xpose.msk.msra.mxu1 %vm72_vm0, %v36_v18 }
  0x2b   :  { %171 = vmatpush.xpose.msk.msra.mxu1 %vm72_vm0, %v35_v19 }
  0x2f   :  { %172 = vmatpush.xpose.msk.msra.mxu1 %vm72_vm0, %v34_v20 }
  0x33   :  { %173 = vmatpush.xpose.msk.msra.mxu1 %vm72_vm0, %v33_v21 }
  0x37   :  { %174 = vmatpush.xpose.msk.msra.mxu1 %vm72_vm0, %v32_v22 }
  0x3b   :  { %175 = vmatpush.xpose.msk.msra.mxu1 %vm72_vm0, %v31_v23 }
  0x3f   :  { %176 = vmatpush.xpose.msk.msra.mxu1 %vm72_vm0, %v30_v24 }
  0x9e   :  { %v64_v26 = vpop.f32.mrf.mxu0 }
  0x9f   :  { %v65_v27 = vadd.f32 %v64_v26, %v46_v25 }
  0xa1   :  { %v67_v28 = vmul.f32 0.5, %v65_v27 }
  0xa3   :  { %179 = vtanh.f32 %v67_v28 }
  0xa9   :  { %v180_v29 = vpop.eup %179 }
  0xaa   :  { %v69_v30 = vmul.f32 0.5, %v180_v29 }
  0xac   :  { %v70_v31 = vadd.f32 0.5, %v69_v30 }
  0xae   :  { %177 = vmatmul.msk.f32.vlgmr.msra.gmra.mxu1 %vm72_vm0, %v70_v31 }
 0x12b   :  { %v141_v33 = vpop.f32.mrf.mxu1 }
 0x12c   :  { %v142_v34 = vadd.f32 %v141_v33, %v71_v32 }
 0x12e   :  { %144 = vst [vmem:[#allocation2] sm:$0x1] %v142_v34 }
 0x12f   :  { %155 = dma.vmem_to_hbm [thread:$0]  %s151_s20, 16, %s153_s23, [#allocation3]  }
 0x130   :  { %205 = dma.done.wait [#allocation3], 16  }
 0x131   :  { %206 = vsyncadd [#allocation3], 4294967280 }
 0x132   :  { %160 = vsyncpa [#allocation3], 1 }

</bundles_post_ra>
